<compile_context>
chip_gen: v7x
topology: tpu7x:2x2x1
jax: 0.10.0
libtpu: 0.0.40
codegen_flags: <defaults>
</compile_context>

<pallas_src>
import functools

import jax
import jax.numpy as jnp
from jax import lax
from jax.experimental import pallas as pl
from jax.experimental.pallas import tpu as pltpu


def _softplus(x):
    # numerically-stable softplus, elementwise (VPU/EUP friendly)
    return jnp.maximum(x, 0.0) + jnp.log1p(jnp.exp(-jnp.abs(x)))


def _round_up(x, m):
    return ((x + m - 1) // m) * m


def _tpu_config():
    """Generation-aware grid / VMEM settings (conservative when unknown)."""
    try:
        kind = jax.devices()[0].device_kind.lower()
    except Exception:
        kind = ""
    mib = 1024 * 1024
    if "v2" in kind or "v3" in kind:
        # old cores: ~16 MiB VMEM, one TensorCore per JAX device
        return {"num_parts": 1, "vmem_budget": 8 * mib, "vmem_limit": 14 * mib}
    if ("v5e" in kind or "v6e" in kind
            or ("lite" in kind and ("v5" in kind or "v6" in kind))):
        # single TensorCore, 128 MiB physical VMEM -> big tiles, explicit limit
        # above the 16 MiB (v5e) / 32 MiB (v6e) scoped defaults.
        return {"num_parts": 1, "vmem_budget": 40 * mib, "vmem_limit": 64 * mib}
    # v4 / v5p / v7x / unknown: assume 2 TensorCores per device and <= 64 MiB
    # physical VMEM per core (v7x), keep the working set ~22 MiB and the scoped
    # limit at the 32 MiB default.
    return {"num_parts": 2, "vmem_budget": 22 * mib, "vmem_limit": 32 * mib}


def _choose_tile_n(n, c, in_itemsize, vmem_budget):
    """Rows per block, sized against an honest VMEM model.

    Per-row VMEM cost (the lane dim pads up to a multiple of 128 in VMEM):
      - 2 pipelined x buffers:       ceff * itemsize each
      - 2 pipelined target buffers:  512 B each  ((tile_n, 1) int32 -> 128 lanes)
      - ~5 full-tile f32/i32 in-kernel temporaries (centered x, its square,
        the masked copy, the column iota, slack)
      - small per-row column temporaries
    """
    ceff = _round_up(c, 128)
    bytes_per_row = 2 * (ceff * in_itemsize + 512) + 5 * ceff * 4 + 64
    rows = max(8, (vmem_budget - (1 << 20)) // bytes_per_row)
    rows = min(rows, 1 << 16)
    rows = (rows // 8) * 8
    cap = max(8, (n // 8) * 8)        # never exceed the array (rows stay mult. of 8)
    return int(min(rows, cap))


def beta_loss_kernel(scale_ref, loc_ref, inv_scale_ref, x_ref, t_ref, o_ref, *,
                     n_valid, tiles_per_part):
    """One (TILE_N, C) row tile -> masked partial sum into the per-part block.

    scale/loc/inv_scale : SMEM (1,1) f32 scalars
    x_ref               : VMEM (TILE_N, C) f32/bf16 tile
    t_ref               : VMEM (TILE_N, 1) i32 tile
    o_ref               : VMEM (1, 1) f32 per-part partial sum (accumulator)
    """
    p = pl.program_id(0)                    # part (megacore split)
    i = pl.program_id(1)                    # row-tile index within the part
    tile_idx = p * tiles_per_part + i       # un-clamped logical tile index

    x = x_ref[...].astype(jnp.float32)      # (TILE_N, C); bf16 upcast happens here
    tgt = t_ref[...]                        # (TILE_N, 1) int32
    tile_n, c = x.shape

    # Center each row by its first element: the one-pass sum/sum-of-squares
    # stays well conditioned when logits carry a large common offset
    # (torch.std is effectively two-pass).  z is invariant to the shift.
    xc = x - x[:, :1]

    # gather(1, targets) -> masked select + row sum (no dynamic gather on TPU).
    # NOTE: out-of-range targets silently contribute 0 (torch.gather would raise).
    col = lax.broadcasted_iota(jnp.int32, (tile_n, c), 1)
    ts = jnp.sum(jnp.where(col == tgt, xc, 0.0), axis=1, keepdims=True)

    s1 = jnp.sum(xc, axis=1, keepdims=True)
    s2 = jnp.sum(xc * xc, axis=1, keepdims=True)
    mu = s1 * jnp.float32(1.0 / c)
    var = jnp.maximum((s2 - mu * s1) * jnp.float32(1.0 / (c - 1)), 0.0)
    # NOTE: a constant row (var == 0) yields Inf, same hazard as the reference.
    inv_sd = lax.rsqrt(var)                 # EUP slot (replaces sqrt + divide)

    scale = scale_ref[0, 0]
    loc = loc_ref[0, 0]
    inv_scale = inv_scale_ref[0, 0]         # 1/scale hoisted to the wrapper
    z = (ts - mu) * inv_sd
    z_losses = inv_scale * _softplus(scale * (loc - z))       # (TILE_N, 1)

    # Mask rows past the true N: covers the ragged final block (no host-side
    # padding of the input) and fully-out-of-range overflow tiles of the last
    # grid part (whose index_map is clamped to the last valid block index).
    row0 = tile_idx * tile_n
    rows = row0 + lax.broadcasted_iota(jnp.int32, (tile_n, 1), 0)
    z_losses = jnp.where(rows < n_valid, z_losses, 0.0)

    partial = jnp.sum(z_losses, axis=0, keepdims=True)        # (1, 1)

    @pl.when(i == 0)
    def _():
        o_ref[...] = jnp.zeros_like(o_ref)

    o_ref[...] += partial

    # TODO(synk): profiling-gated follow-ups (need a bundle dump first):
    #   - offload the three row sums over C to the idle MXU (ones-matrix matmul,
    #     HIGHEST precision) if the XLU lane-reduce slot binds on v7x,
    #   - relayout the (TILE_N, 1) column to (TILE_N//128, 128) before the
    #     rsqrt/softplus so the EUP works on lane-dense vregs,
    #   - bump the x BlockSpec to pipeline_mode=pl.Buffered(3) if the trace
    #     shows exposed DMA at part boundaries.


def beta_loss(inputs, targets, logit_alpha, logit_beta):
    """inputs: (N, C) f32/bf16, targets: (N,) int  ->  scalar f32 loss (mean)."""
    n, c = inputs.shape
    assert inputs.ndim == 2 and targets.ndim == 1 and targets.shape[0] == n
    assert c >= 2, "unbiased std (ddof=1) requires at least 2 classes"

    # accept bf16 directly (halves HBM bytes); anything else -> f32
    if inputs.dtype not in (jnp.float32, jnp.bfloat16):
        inputs = inputs.astype(jnp.float32)
    t = targets.astype(jnp.int32).reshape(n, 1)

    # parameter setup (glue, plain JAX)
    scale = _softplus(jnp.asarray(logit_alpha, jnp.float32)).reshape(1, 1)
    loc = _softplus(jnp.asarray(logit_beta, jnp.float32)).reshape(1, 1)
    inv_scale = 1.0 / scale

    cfg = _tpu_config()
    tile_n = _choose_tile_n(n, c, jnp.dtype(inputs.dtype).itemsize,
                            cfg["vmem_budget"])
    num_row_tiles = pl.cdiv(n, tile_n)
    num_parts = min(cfg["num_parts"], num_row_tiles)
    tiles_per_part = pl.cdiv(num_row_tiles, num_parts)

    def row_block_map(p, i):
        # Clamp so overflow iterations of the last part stay in bounds; their
        # rows are zero-masked inside the kernel (row index uses the un-clamped
        # tile index), so nothing is double counted.
        return (jnp.minimum(p * tiles_per_part + i, num_row_tiles - 1), 0)

    kernel = functools.partial(
        beta_loss_kernel, n_valid=n, tiles_per_part=tiles_per_part)

    partials = pl.pallas_call(
        kernel,
        out_shape=jax.ShapeDtypeStruct((num_parts, 1), jnp.float32),
        grid=(num_parts, tiles_per_part),
        in_specs=[
            pl.BlockSpec(memory_space=pltpu.SMEM),       # scale     (1, 1)
            pl.BlockSpec(memory_space=pltpu.SMEM),       # loc       (1, 1)
            pl.BlockSpec(memory_space=pltpu.SMEM),       # 1/scale   (1, 1)
            pl.BlockSpec((tile_n, c), row_block_map),    # inputs row tile
            pl.BlockSpec((tile_n, 1), row_block_map),    # targets row tile
        ],
        out_specs=pl.BlockSpec((1, 1), lambda p, i: (p, 0)),   # per-part partial
        compiler_params=pltpu.CompilerParams(
            dimension_semantics=("parallel", "arbitrary"),
            vmem_limit_bytes=int(cfg["vmem_limit"]),
        ),
    )(scale, loc, inv_scale, inputs, t)

    # reduce=True, size_average=True  ->  mean over all N rows
    return jnp.sum(partials) / jnp.float32(n)


def beta_loss_ref(inputs, targets, logit_alpha, logit_beta):
    """Pure-JAX reference for the sanity check."""
    x = inputs.astype(jnp.float32)
    scale = _softplus(jnp.float32(logit_alpha))
    loc = _softplus(jnp.float32(logit_beta))
    ts = jnp.take_along_axis(x, targets[:, None].astype(jnp.int32), axis=1)
    mu = jnp.mean(x, axis=1, keepdims=True)
    sd = jnp.std(x, axis=1, keepdims=True, ddof=1)
    z = (ts - mu) / sd
    zl = (1.0 / scale) * _softplus(scale * (loc - z))
    return jnp.mean(zl)


def _check(out, ref, tag):
    assert jnp.allclose(out, ref, rtol=2e-4, atol=1e-5), (tag, float(out), float(ref))


if __name__ == "__main__":
    key = jax.random.PRNGKey(0)
    logit_alpha = 2.0   # deterministic init, matches nn.Parameter(torch.tensor(2.0))
    logit_beta = 2.0
    ks = jax.random.split(key, 8)

    # case 1: tiny (single full block)
    n1, c1 = 8, 32
    x1 = jax.random.normal(ks[0], (n1, c1), dtype=jnp.float32)
    t1 = jax.random.randint(ks[1], (n1,), 0, c1, dtype=jnp.int32)
    o1 = jax.block_until_ready(beta_loss(x1, t1, logit_alpha, logit_beta))
    _check(o1, beta_loss_ref(x1, t1, logit_alpha, logit_beta), "case1")

    # case 2: ragged N with lane-wide C (exercises the masked final block)
    n2, c2 = 50, 128
    x2 = jax.random.normal(ks[2], (n2, c2), dtype=jnp.float32)
    t2 = jax.random.randint(ks[3], (n2,), 0, c2, dtype=jnp.int32)
    o2 = jax.block_until_ready(beta_loss(x2, t2, logit_alpha, logit_beta))
    _check(o2, beta_loss_ref(x2, t2, logit_alpha, logit_beta), "case2")

    # case 3: many rows (multiple streamed tiles + ragged tail; on 2-part
    # configs also exercises the clamped overflow tile of the last part)
    n3, c3 = 20000, 64
    x3 = 3.0 + jax.random.normal(ks[4], (n3, c3), dtype=jnp.float32)
    t3 = jax.random.randint(ks[5], (n3,), 0, c3, dtype=jnp.int32)
    o3 = jax.block_until_ready(beta_loss(x3, t3, logit_alpha, logit_beta))
    _check(o3, beta_loss_ref(x3, t3, logit_alpha, logit_beta), "case3")

    # case 4: bf16 activations accepted directly (upcast happens in-kernel)
    n4, c4 = 1000, 256
    x4 = jax.random.normal(ks[6], (n4, c4), dtype=jnp.bfloat16)
    t4 = jax.random.randint(ks[7], (n4,), 0, c4, dtype=jnp.int32)
    o4 = jax.block_until_ready(beta_loss(x4, t4, logit_alpha, logit_beta))
    _check(o4, beta_loss_ref(x4, t4, logit_alpha, logit_beta), "case4")

    print("KERNEL_OK")
</pallas_src>

<mosaic_0001>
module attributes {stable_mosaic.version = 11 : i64} {
  func.func @beta_loss_kernel(%arg0: i32, %arg1: i32, %arg2: memref<1x1xf32, #tpu.memory_space<smem>>, %arg3: memref<1x1xf32, #tpu.memory_space<smem>>, %arg4: memref<1x1xf32, #tpu.memory_space<smem>>, %arg5: memref<8x32xf32, #tpu.memory_space<vmem>>, %arg6: memref<8x1xi32, #tpu.memory_space<vmem>>, %arg7: memref<1x1xf32, #tpu.memory_space<vmem>>) attributes {dimension_semantics = [#tpu.dimension_semantics<parallel>, #tpu.dimension_semantics<arbitrary>], iteration_bounds = array<i64: 1, 1>, scalar_prefetch = 0 : i64, scratch_operands = 0 : i64, tpu.core_type = #tpu.core_type<tc>, window_params = [{transform_indices = @transform_0, window_bounds = array<i64: 1, 1>}, {transform_indices = @transform_1, window_bounds = array<i64: 1, 1>}, {transform_indices = @transform_2, window_bounds = array<i64: 1, 1>}, {transform_indices = @transform_3, window_bounds = array<i64: 8, 32>}, {transform_indices = @transform_4, window_bounds = array<i64: 8, 1>}, {transform_indices = @transform_5, window_bounds = array<i64: 1, 1>}]} {
    %c1_i32 = arith.constant 1 : i32
    %0 = arith.muli %arg0, %c1_i32 : i32
    %1 = arith.addi %0, %arg1 : i32
    %c0 = arith.constant 0 : index
    %c0_0 = arith.constant 0 : index
    %2 = vector.load %arg5[%c0, %c0_0] : memref<8x32xf32, #tpu.memory_space<vmem>>, vector<8x32xf32>
    %c0_1 = arith.constant 0 : index
    %c0_2 = arith.constant 0 : index
    %3 = vector.load %arg6[%c0_1, %c0_2] : memref<8x1xi32, #tpu.memory_space<vmem>>, vector<8x1xi32>
    %4 = vector.extract_strided_slice %2 {offsets = [0, 0], sizes = [8, 1], strides = [1, 1]} : vector<8x32xf32> to vector<8x1xf32>
    %5 = vector.broadcast %4 : vector<8x1xf32> to vector<8x32xf32>
    %6 = arith.subf %2, %5 : vector<8x32xf32>
    %7 = tpu.iota {dimensions = array<i32: 1>} : vector<8x32xi32>
    %8 = vector.broadcast %3 : vector<8x1xi32> to vector<8x32xi32>
    %9 = arith.cmpi eq, %7, %8 : vector<8x32xi32>
    %cst = arith.constant 0.000000e+00 : f32
    %10 = vector.broadcast %cst : f32 to vector<8x32xf32>
    %11 = arith.select %9, %6, %10 : vector<8x32xi1>, vector<8x32xf32>
    %cst_3 = arith.constant dense<0.000000e+00> : vector<8xf32>
    %12 = vector.multi_reduction <add>, %11, %cst_3 [1] : vector<8x32xf32> to vector<8xf32>
    %13 = vector.shape_cast %12 : vector<8xf32> to vector<8x1xf32>
    %cst_4 = arith.constant dense<0.000000e+00> : vector<8xf32>
    %14 = vector.multi_reduction <add>, %6, %cst_4 [1] : vector<8x32xf32> to vector<8xf32>
    %15 = vector.shape_cast %14 : vector<8xf32> to vector<8x1xf32>
    %16 = arith.mulf %6, %6 : vector<8x32xf32>
    %cst_5 = arith.constant dense<0.000000e+00> : vector<8xf32>
    %17 = vector.multi_reduction <add>, %16, %cst_5 [1] : vector<8x32xf32> to vector<8xf32>
    %18 = vector.shape_cast %17 : vector<8xf32> to vector<8x1xf32>
    %cst_6 = arith.constant 3.125000e-02 : f32
    %19 = vector.broadcast %cst_6 : f32 to vector<8x1xf32>
    %20 = arith.mulf %15, %19 : vector<8x1xf32>
    %21 = arith.mulf %20, %15 : vector<8x1xf32>
    %22 = arith.subf %18, %21 : vector<8x1xf32>
    %cst_7 = arith.constant 0.0322580636 : f32
    %23 = vector.broadcast %cst_7 : f32 to vector<8x1xf32>
    %24 = arith.mulf %22, %23 : vector<8x1xf32>
    %cst_8 = arith.constant 0.000000e+00 : f32
    %25 = vector.broadcast %cst_8 : f32 to vector<8x1xf32>
    %26 = arith.maximumf %24, %25 : vector<8x1xf32>
    %27 = math.rsqrt %26 : vector<8x1xf32>
    %c0_9 = arith.constant 0 : index
    %c0_10 = arith.constant 0 : index
    %28 = memref.load %arg2[%c0_9, %c0_10] : memref<1x1xf32, #tpu.memory_space<smem>>
    %c0_11 = arith.constant 0 : index
    %c0_12 = arith.constant 0 : index
    %29 = memref.load %arg3[%c0_11, %c0_12] : memref<1x1xf32, #tpu.memory_space<smem>>
    %c0_13 = arith.constant 0 : index
    %c0_14 = arith.constant 0 : index
    %30 = memref.load %arg4[%c0_13, %c0_14] : memref<1x1xf32, #tpu.memory_space<smem>>
    %31 = arith.subf %13, %20 : vector<8x1xf32>
    %32 = arith.mulf %31, %27 : vector<8x1xf32>
    %33 = vector.broadcast %29 : f32 to vector<8x1xf32>
    %34 = arith.subf %33, %32 : vector<8x1xf32>
    %35 = vector.broadcast %28 : f32 to vector<8x1xf32>
    %36 = arith.mulf %35, %34 : vector<8x1xf32>
    %cst_15 = arith.constant 0.000000e+00 : f32
    %37 = vector.broadcast %cst_15 : f32 to vector<8x1xf32>
    %38 = arith.maximumf %36, %37 : vector<8x1xf32>
    %39 = math.absf %36 : vector<8x1xf32>
    %cst_16 = arith.constant 0.000000e+00 : f32
    %40 = vector.broadcast %cst_16 : f32 to vector<8x1xf32>
    %41 = arith.subf %40, %39 : vector<8x1xf32>
    %42 = math.exp %41 : vector<8x1xf32>
    %43 = math.log1p %42 : vector<8x1xf32>
    %44 = arith.addf %38, %43 : vector<8x1xf32>
    %45 = vector.broadcast %30 : f32 to vector<8x1xf32>
    %46 = arith.mulf %45, %44 : vector<8x1xf32>
    %c8_i32 = arith.constant 8 : i32
    %47 = arith.muli %1, %c8_i32 : i32
    %48 = tpu.iota {dimensions = array<i32: 0>} : vector<8x1xi32>
    %49 = vector.broadcast %47 : i32 to vector<8x1xi32>
    %50 = arith.addi %49, %48 : vector<8x1xi32>
    %c8_i32_17 = arith.constant 8 : i32
    %51 = vector.broadcast %c8_i32_17 : i32 to vector<8x1xi32>
    %52 = arith.cmpi slt, %50, %51 : vector<8x1xi32>
    %cst_18 = arith.constant 0.000000e+00 : f32
    %53 = vector.broadcast %cst_18 : f32 to vector<8x1xf32>
    %54 = arith.select %52, %46, %53 : vector<8x1xi1>, vector<8x1xf32>
    %cst_19 = arith.constant dense<0.000000e+00> : vector<1xf32>
    %55 = vector.multi_reduction <add>, %54, %cst_19 [0] : vector<8x1xf32> to vector<1xf32>
    %56 = vector.shape_cast %55 : vector<1xf32> to vector<1x1xf32>
    %c0_i32 = arith.constant 0 : i32
    %57 = arith.cmpi eq, %arg1, %c0_i32 : i32
    %58 = arith.extui %57 : i1 to i32
    %c0_i32_20 = arith.constant 0 : i32
    %59 = arith.cmpi ne, %58, %c0_i32_20 : i32
    scf.if %59 {
      %cst_25 = arith.constant 0.000000e+00 : f32
      %63 = vector.broadcast %cst_25 : f32 to vector<1x1xf32>
      %c0_26 = arith.constant 0 : index
      %c0_27 = arith.constant 0 : index
      %64 = vector.load %arg7[%c0_26, %c0_27] : memref<1x1xf32, #tpu.memory_space<vmem>>, vector<1x1xf32>
      tpu.vector_store %arg7[%c0_26, %c0_27], %63 {strides = array<i32>} : memref<1x1xf32, #tpu.memory_space<vmem>>, vector<1x1xf32>,
    } else {
    }
    %c0_21 = arith.constant 0 : index
    %c0_22 = arith.constant 0 : index
    %60 = vector.load %arg7[%c0_21, %c0_22] : memref<1x1xf32, #tpu.memory_space<vmem>>, vector<1x1xf32>
    %61 = arith.addf %60, %56 : vector<1x1xf32>
    %c0_23 = arith.constant 0 : index
    %c0_24 = arith.constant 0 : index
    %62 = vector.load %arg7[%c0_23, %c0_24] : memref<1x1xf32, #tpu.memory_space<vmem>>, vector<1x1xf32>
    tpu.vector_store %arg7[%c0_23, %c0_24], %61 {strides = array<i32>} : memref<1x1xf32, #tpu.memory_space<vmem>>, vector<1x1xf32>,
    return
  }
  func.func @transform_0(%arg0: i32, %arg1: i32) -> (i32, i32) {
    %c0_i32 = arith.constant 0 : i32
    %c0_i32_0 = arith.constant 0 : i32
    %c0_i32_1 = arith.constant 0 : i32
    return %c0_i32, %c0_i32_0 : i32, i32
  }
  func.func @transform_1(%arg0: i32, %arg1: i32) -> (i32, i32) {
    %c0_i32 = arith.constant 0 : i32
    %c0_i32_0 = arith.constant 0 : i32
    %c0_i32_1 = arith.constant 0 : i32
    return %c0_i32, %c0_i32_0 : i32, i32
  }
  func.func @transform_2(%arg0: i32, %arg1: i32) -> (i32, i32) {
    %c0_i32 = arith.constant 0 : i32
    %c0_i32_0 = arith.constant 0 : i32
    %c0_i32_1 = arith.constant 0 : i32
    return %c0_i32, %c0_i32_0 : i32, i32
  }
  func.func @transform_3(%arg0: i32, %arg1: i32) -> (i32, i32) {
    %c1_i32 = arith.constant 1 : i32
    %0 = arith.muli %arg0, %c1_i32 : i32
    %1 = arith.addi %0, %arg1 : i32
    %c0_i32 = arith.constant 0 : i32
    %2 = arith.minsi %1, %c0_i32 : i32
    %c0_i32_0 = arith.constant 0 : i32
    %c0_i32_1 = arith.constant 0 : i32
    return %2, %c0_i32_0 : i32, i32
  }
  func.func @transform_4(%arg0: i32, %arg1: i32) -> (i32, i32) {
    %c1_i32 = arith.constant 1 : i32
    %0 = arith.muli %arg0, %c1_i32 : i32
    %1 = arith.addi %0, %arg1 : i32
    %c0_i32 = arith.constant 0 : i32
    %2 = arith.minsi %1, %c0_i32 : i32
    %c0_i32_0 = arith.constant 0 : i32
    %c0_i32_1 = arith.constant 0 : i32
    return %2, %c0_i32_0 : i32, i32
  }
  func.func @transform_5(%arg0: i32, %arg1: i32) -> (i32, i32) {
    %c0_i32 = arith.constant 0 : i32
    %c0_i32_0 = arith.constant 0 : i32
    return %arg0, %c0_i32 : i32, i32
  }
}

</mosaic_0001>

<bundles_post_ra>
// kernel: tpu_custom_call.1
= control target key start
LH: loop header
LB: loop body
LE: loop exit
PB: predicated region body
PF: predicated region fallthrough
CT: control target
= control target key end

     0   :  { %s282_s0 = inlined_call_operand.<no memory space> [shape: f32[1,1], index: 0, kind: input, shape index: {}]   ;;  %s283_s1 = inlined_call_operand.<no memory space> [shape: f32[1,1], index: 1, kind: input, shape index: {}]   ;;  %s284_s2 = inlined_call_operand.<no memory space> [shape: f32[1,1], index: 2, kind: input, shape index: {}]   ;;  %s285_s3 = inlined_call_operand.vmem [shape: f32[8,32], index: 3, kind: input, shape index: {}]   ;;  %s286_s4 = inlined_call_operand.vmem [shape: s32[8,1], index: 4, kind: input, shape index: {}]   ;;  %s287_s5 = inlined_call_operand.hbm [shape: f32[1,1], index: 5, kind: output, shape index: {}]  }
   0x1   :  { %v79_v0 = vld [vmem:[%s285_s3] sm:$0xff] }
   0x2   :  { %13 = vsyncpa [#allocation6], 0  ;;  %v220_v1 = vmov 0   ;;  %v80_v2 = vld [vmem:[%s286_s4] sm:$0xff]  ;;  %v87_v3 = vlaneseq  ;;  %vm94_vm0 = vcmask 261120   ;;  %vm154_vm2 = vcmask 0  }
   0x3   :  { %189 = vset.pattern.permute.xlu0 %v220_v1  ;;  %v221_v13 = vmov 0.0   ;;  %v116_v24 = vstv %s283_s1  ;;  %v118_v26 = vstv %s282_s0  ;;  %v135_v41 = vstv %s284_s2  ;;  %s222_s0 = smov [#allocation5]  }
   0x4   :  { %83 = vperm.xlu0 %189, %v79_v0   ;;  %v88_v6 = vand.u32 127, %v87_v3  ;;  %155 = vst.msk [vmem:[#allocation5] sm:$0x1] %vm154_vm2, %v221_v13  ;;  %s166_s25 = sshll.u32 %s222_s0, 4  ;;  %s167_s25 = int_to_ptr.vmem [resolvable:$true] %s166_s25 }
   0x5   :  { %s196_s26 = scalar_lea.vmem %s167_s25, 16  ;;  %s200_s27 = scalar_lea.vmem %s167_s25, 32 }
   0x6   :  { %p197_p0 = scmp.ne.s32.totalorder %s167_s25, %s196_s26  ;;  %p201_p1 = scmp.lt.s32.totalorder %s167_s25, %s167_s25 }
   0x7   :  { %p202_p2 = scmp.lt.s32.totalorder %s200_s27, %s196_s26 }
   0x8   :  { %90 = vperm.xlu0 %189, %v80_v2  }
   0x9   :  { %p203_p3 = por %p202_p2, %p201_p1 }
   0xb   :  { %v156_v50 = vld [vmem:[#allocation5] sm:$0x1]  ;;  %p204_p4 = pnand %p203_p3, %p197_p0 }
  0x83   :  { %v84_v4 = vpop.permute.xlu0 %83 }
  0x84   :  { %v86_v5 = vsub.f32 %v79_v0, %v84_v4 }
  0x86   :  { %v98_v7 = vsel %vm94_vm0, %v86_v5, 0.0  ;;  %v101_v8 = vmul.f32 %v86_v5, %v86_v5 }
  0x87   :  { %99 = vadd.xlane.f32.xlu1 %v98_v7  ;;  %v91_v9 = vpop.permute.xlu0 %90 }
  0x88   :  { %vm92_vm1 = vcmp.eq.s32.totalorder %v88_v6, %v91_v9  ;;  %v102_v11 = vsel %vm94_vm0, %v101_v8, 0.0 }
  0x89   :  { %v93_v10 = vsel %vm92_vm1, %v86_v5, 0.0 }
  0x8a   :  { %v95_v12 = vsel %vm94_vm0, %v93_v10, 0.0 }
  0x8b   :  { %103 = vadd.xlane.f32.xlu1 %v102_v11  ;;  %96 = vadd.xlane.f32.xlu0 %v95_v12 }
 0x114   :  { %v100_v14 = vpop.xlane.xlu1 %99 }
 0x115   :  { %v105_v15 = vmul.f32 0.03125, %v100_v14 }
 0x117   :  { %v106_v16 = vmul.f32 %v105_v15, %v100_v14 }
 0x118   :  { %v104_v17 = vpop.xlane.xlu1 %103  ;;  %v97_v21 = vpop.xlane.xlu0 %96 }
 0x119   :  { %v107_v18 = vsub.f32 %v104_v17, %v106_v16  ;;  %v114_v22 = vsub.f32 %v97_v21, %v105_v15 }
 0x11b   :  { %v108_v19 = vmul.f32 0.032258064, %v107_v18 }
 0x11d   :  { %v109_v20 = vmax.f32 %v108_v19, 0.0 }
 0x11f   :  { %190 = vrsqrt.f32 %v109_v20 }
 0x129   :  { %v191_v23 = vpop.eup %190 }
 0x12a   :  { %v115_v25 = vmul.f32 %v191_v23, %v114_v22 }
 0x12c   :  { %v117_v27 = vsub.f32 %v116_v24, %v115_v25 }
 0x12e   :  { %v119_v28 = vmul.f32 %v118_v26, %v117_v27 }
 0x130   :  { %v121_v29 = vand.u32 2147483647, %v119_v28  ;;  %v120_v40 = vmax.f32 %v119_v28, 0.0 }
 0x132   :  { %v122_v30 = vsub.f32 0.0, %v121_v29 }
 0x134   :  { %v123_v31 = vmul.f32 1.442695, %v122_v30 }
 0x136   :  { %192 = vpow2.f32 %v123_v31 }
 0x140   :  { %v193_v32 = vpop.eup %192 }
 0x141   :  { %v125_v33 = vadd.f32 1.0, %v193_v32  ;;  %v128_v34 = vmul.f32 -0.5, %v193_v32  ;;  %v131_v36 = vand.u32 2147483647, %v193_v32 }
 0x143   :  { %194 = vlog2.f32 %v125_v33  ;;  %v129_v35 = vadd.f32 1.0, %v128_v34  ;;  %vm132_vm3 = vcmp.lt.f32.partialorder %v131_v36, 0.0004427343 }
 0x145   :  { %v130_v39 = vmul.f32 %v193_v32, %v129_v35 }
 0x14d   :  { %v195_v37 = vpop.eup %194 }
 0x14e   :  { %v127_v38 = vmul.f32 0.6931472, %v195_v37 }
 0x150   :  { %v133_v42 = vsel %vm132_vm3, %v130_v39, %v127_v38 }
 0x151   :  { %v134_v43 = vadd.f32 %v133_v42, %v120_v40 }
 0x153   :  { %v136_v44 = vmul.f32 %v135_v41, %v134_v43 }
 0x155   :  { %v144_v45 = vrot.slane %v136_v44, 4 }
 0x157   :  { %v145_v46 = vadd.f32 %v144_v45, %v136_v44 }
 0x159   :  { %v146_v47 = vrot.slane %v145_v46, 2 }
 0x15b   :  { %v147_v48 = vadd.f32 %v146_v47, %v145_v46 }
 0x15d   :  { %v148_v49 = vrot.slane %v147_v48, 1 }
 0x15f   :  { %v149_v51 = vadd.f32 %v148_v49, %v147_v48 }
 0x161   :  { %v157_v52 = vadd.f32 %v156_v50, %v149_v51 }
 0x163   :  { %159 = vst.msk [vmem:[#allocation5] sm:$0x1] %vm154_vm2, %v157_v52 }
 0x164   :  { %207 = shalt.err (!%p204_p4)
}
 0x165   :  { %s208_s29 = scalar_lea.hbm %s287_s5, 16 }
 0x166   :  { %p209_p5 = scmp.ne.s32.totalorder %s287_s5, %s208_s29  ;;  %p212_p6 = scmp.lt.u32.totalorder %s208_s29, %s287_s5 }
 0x168   :  { %p214_p7 = pnand %p212_p6, %p209_p5 }
 0x16a   :  { %217 = shalt.err (!%p214_p7)
}
 0x16b   :  { %169 = dma.vmem_to_hbm [thread:$0]  %s167_s25, 16, %s287_s5, [#allocation6]  }
 0x16c   :  { %218 = dma.done.wait [#allocation6], 16  }
 0x16d   :  { %219 = vsyncadd [#allocation6], 4294967280 }
 0x16e   :  { %173 = vsyncpa [#allocation6], 1 }

</bundles_post_ra>
